<compile_context>
chip_gen: v5e
topology: v5e:2x2
jax: 0.10.0
libtpu: 0.0.40
codegen_flags: <defaults>
</compile_context>

<pallas_src>
import functools

import numpy as np
import jax
import jax.numpy as jnp
from jax import lax
from jax.experimental import pallas as pl
from jax.experimental.pallas import tpu as pltpu


# ----------------------------- config (synthetic, small) -----------------------------
class config:
    n_fft = 64
    hop_length = 16
    win_length = 64
    sampling_rate = 16000
    n_mel_channels = 16
    mel_fmin = 0.0
    mel_fmax = 8000.0


# ----------------------------- librosa-style mel filterbank (numpy, deterministic) ---
def _hz_to_mel(f):
    f = np.asarray(f, dtype=np.float64)
    f_sp = 200.0 / 3.0
    mels = f / f_sp
    min_log_hz = 1000.0
    min_log_mel = min_log_hz / f_sp
    logstep = np.log(6.4) / 27.0
    return np.where(f >= min_log_hz,
                    min_log_mel + np.log(np.maximum(f, min_log_hz) / min_log_hz) / logstep,
                    mels)


def _mel_to_hz(m):
    m = np.asarray(m, dtype=np.float64)
    f_sp = 200.0 / 3.0
    freqs = f_sp * m
    min_log_hz = 1000.0
    min_log_mel = min_log_hz / f_sp
    logstep = np.log(6.4) / 27.0
    return np.where(m >= min_log_mel,
                    min_log_hz * np.exp(logstep * (m - min_log_mel)),
                    freqs)


def librosa_mel_fn(sr, n_fft, n_mels, fmin, fmax):
    fftfreqs = np.linspace(0.0, sr / 2.0, 1 + n_fft // 2)
    mel_f = _mel_to_hz(np.linspace(_hz_to_mel(fmin), _hz_to_mel(fmax), n_mels + 2))
    fdiff = np.diff(mel_f)
    ramps = mel_f[:, None] - fftfreqs[None, :]
    lower = -ramps[:-2] / fdiff[:-1, None]
    upper = ramps[2:] / fdiff[1:, None]
    weights = np.maximum(0.0, np.minimum(lower, upper))
    enorm = 2.0 / (mel_f[2:n_mels + 2] - mel_f[:n_mels])
    weights *= enorm[:, None]
    return weights.astype(np.float32)          # (n_mels, n_fft//2 + 1)


# ----------------------------- deterministic constants (built once, cached) ----------
@functools.lru_cache(maxsize=None)
def _build_constants(n_fft, win_length, sr, n_mel, fmin, fmax):
    F = n_fft // 2 + 1
    fpad = max(64, ((F + 7) // 8) * 8)          # padded freq axis, sublane-aligned halves
    assert fpad % 8 == 0, "real/imag split must land on a sublane-tile boundary"

    # periodic Hann window (torch.hann_window default), centered into n_fft samples
    n = np.arange(win_length)
    win = 0.5 * (1.0 - np.cos(2.0 * np.pi * n / win_length))
    win_full = np.zeros(n_fft, dtype=np.float64)
    off = (n_fft - win_length) // 2
    win_full[off:off + win_length] = win

    mel_basis = librosa_mel_fn(sr, n_fft, n_mel, fmin, fmax)          # (n_mel, F)

    # fused, zero-padded windowed-DFT basis: one matrix for both real & imag parts
    nn = np.arange(n_fft)[None, :]
    kk = np.arange(F)[:, None]
    ang = 2.0 * np.pi * kk * nn / n_fft
    basis = np.zeros((2 * fpad, n_fft), dtype=np.float32)
    basis[:F, :] = (win_full[None, :] * np.cos(ang)).astype(np.float32)
    basis[fpad:fpad + F, :] = (win_full[None, :] * np.sin(ang)).astype(np.float32)

    melw = np.zeros((n_mel, fpad), dtype=np.float32)
    melw[:, :F] = mel_basis                                           # (n_mel, FPAD)
    return basis, melw, fpad


# ----------------------------- Pallas kernel -----------------------------------------
def _audio2mel_kernel(frames_ref, basis_ref, melw_ref, out_ref):
    # frames_ref: (TILE_NF, n_fft)   frame tile (frames on sublanes, samples on lanes)
    # basis_ref : (2*FPAD, n_fft)    rows [0,F): win*cos, rows [FPAD,FPAD+F): win*sin, rest 0
    # melw_ref  : (n_mel, FPAD)      mel weights, cols [F,FPAD) zero
    # out_ref   : (n_mel, TILE_NF)   log-mel; frames on the lane axis (lane-dense stores)
    frames = frames_ref[...]
    basis = basis_ref[...]
    # single fused STFT matmul:  basis @ frames^T  ->  (2*FPAD, TILE_NF)
    packed = lax.dot_general(basis, frames, (((1,), (1,)), ((), ())),
                             preferred_element_type=jnp.float32)
    half = basis.shape[0] // 2                                  # = FPAD (multiple of 8)
    real_t = packed[:half]                                      # (FPAD, TILE_NF)
    imag_t = packed[half:]                                      # (FPAD, TILE_NF)
    mag_t = jnp.sqrt(real_t * real_t + imag_t * imag_t)         # rows >= F are exactly 0
    mel = jnp.dot(melw_ref[...], mag_t,
                  preferred_element_type=jnp.float32)           # (n_mel, TILE_NF)
    out_ref[...] = jnp.log(jnp.maximum(mel, 1e-5))


# ----------------------------- wrapper (jitted) ---------------------------------------
@jax.jit
def audio2mel(audio):
    """audio: (B, 1, T) float32 -> (B, n_mel_channels, 1 + T//hop) float32."""
    n_fft = config.n_fft
    hop = config.hop_length
    n_mel = config.n_mel_channels

    basis_np, melw_np, fpad = _build_constants(
        n_fft, config.win_length, config.sampling_rate, n_mel,
        config.mel_fmin, config.mel_fmax)

    # ---- glue: squeeze channel, reflect center-pad, frame WITHOUT a gather ----------
    x = jnp.squeeze(audio, axis=1).astype(jnp.float32)          # (B, T)
    B, T = x.shape
    pad = n_fft // 2
    x_pad = jnp.pad(x, ((0, 0), (pad, pad)), mode="reflect")    # torch.stft center=True
    n_frames = 1 + T // hop
    assert n_fft % hop == 0
    # n_fft/hop hop-shifted contiguous views concatenated on the sample axis
    frames = jnp.concatenate(
        [x_pad[:, j * hop: j * hop + n_frames * hop].reshape(B, n_frames, hop)
         for j in range(n_fft // hop)],
        axis=-1)                                                # (B, NF, n_fft)

    # ---- fold batch into the frame axis and pad to a lane-dense tile ----------------
    nf_total = B * n_frames
    # 128-frame tiles saturate v5e's 4x128 MXU; 256 matches the v6e/v7x 2x256 MXU.
    tile_nf = 128 if nf_total <= 128 else 256
    num_tiles = -(-nf_total // tile_nf)
    nf_pad = num_tiles * tile_nf
    frames_flat = frames.reshape(nf_total, n_fft)
    frames_flat = jnp.pad(frames_flat, ((0, nf_pad - nf_total), (0, 0)))

    def _invariant_spec(shape):
        # basis / mel weights are the same block for every grid step; when there is
        # more than one step, single-buffer them (double-buffering a constant only
        # burns VMEM — ~4.3 MB for the n_fft=1024 basis on v7x's 64 MiB VMEM).
        if num_tiles > 1:
            return pl.BlockSpec(shape, lambda t: (0, 0), pipeline_mode=pl.Buffered(1))
        return pl.BlockSpec(shape, lambda t: (0, 0))

    out = pl.pallas_call(
        _audio2mel_kernel,
        out_shape=jax.ShapeDtypeStruct((n_mel, nf_pad), jnp.float32),
        grid_spec=pltpu.PrefetchScalarGridSpec(
            num_scalar_prefetch=0,
            grid=(num_tiles,),                                  # frame tiles only
            in_specs=[
                pl.BlockSpec((tile_nf, n_fft), lambda t: (t, 0)),
                _invariant_spec((2 * fpad, n_fft)),
                _invariant_spec((n_mel, fpad)),
            ],
            out_specs=pl.BlockSpec((n_mel, tile_nf), lambda t: (0, t)),
        ),
        compiler_params=pltpu.CompilerParams(
            dimension_semantics=("parallel",),                  # frame tiles are independent
            vmem_limit_bytes=32 * 1024 * 1024,                  # <= scoped default on v6e/v7x,
        ),                                                      #   raises v5e's 16 MiB default
    )(frames_flat, jnp.asarray(basis_np), jnp.asarray(melw_np))

    # layout plumbing back to PyTorch convention (fused under the same jit):
    # (n_mel, B*NF) -> (B, n_mel, NF)
    out = out[:, :nf_total].reshape(n_mel, B, n_frames)
    return jnp.transpose(out, (1, 0, 2))


# ----------------------------- reference (pure JAX) for sanity ------------------------
def _audio2mel_ref(audio):
    n_fft = config.n_fft
    hop = config.hop_length
    F = n_fft // 2 + 1
    n = np.arange(config.win_length)
    window = (0.5 * (1.0 - np.cos(2.0 * np.pi * n / config.win_length))).astype(np.float32)
    mel_basis = librosa_mel_fn(config.sampling_rate, n_fft, config.n_mel_channels,
                               config.mel_fmin, config.mel_fmax)
    x = jnp.squeeze(audio, axis=1)
    pad = n_fft // 2
    x_pad = jnp.pad(x, ((0, 0), (pad, pad)), mode="reflect")
    n_frames = 1 + (x_pad.shape[1] - n_fft) // hop
    idx = hop * np.arange(n_frames)[:, None] + np.arange(n_fft)[None, :]
    frames = x_pad[:, idx] * window[None, None, :]
    ang = 2.0 * np.pi * np.arange(n_fft)[:, None] * np.arange(F)[None, :] / n_fft
    real = jnp.einsum("btn,nf->btf", frames, jnp.asarray(np.cos(ang), jnp.float32))
    imag = jnp.einsum("btn,nf->btf", frames, jnp.asarray(np.sin(ang), jnp.float32))
    mag = jnp.sqrt(real ** 2 + imag ** 2)                               # (B, NF, F)
    mel = jnp.einsum("mf,btf->bmt", jnp.asarray(mel_basis), mag)        # (B, n_mel, NF)
    return jnp.log(jnp.clip(mel, 1e-5))


# ----------------------------- main ---------------------------------------------------
if __name__ == "__main__":
    key = jax.random.PRNGKey(0)
    B, T = 2, 256
    audio = jax.random.normal(key, (B, 1, T), dtype=jnp.float32)        # (batch, 1, samples)

    mel = jax.block_until_ready(audio2mel(audio))

    ref = jax.block_until_ready(_audio2mel_ref(audio))
    assert mel.shape == ref.shape == (B, config.n_mel_channels, 1 + T // config.hop_length)
    np.testing.assert_allclose(np.asarray(mel), np.asarray(ref), rtol=2e-4, atol=2e-4)

    print("KERNEL_OK")
</pallas_src>

<mosaic_0001>
module attributes {stable_mosaic.version = 11 : i64} {
  func.func @_audio2mel_kernel(%arg0: i32, %arg1: memref<128x64xf32, #tpu.memory_space<vmem>>, %arg2: memref<128x64xf32, #tpu.memory_space<vmem>>, %arg3: memref<16x64xf32, #tpu.memory_space<vmem>>, %arg4: memref<16x128xf32, #tpu.memory_space<vmem>>) attributes {dimension_semantics = [#tpu.dimension_semantics<parallel>], iteration_bounds = array<i64: 1>, scalar_prefetch = 0 : i64, scratch_operands = 0 : i64, tpu.core_type = #tpu.core_type<tc>, window_params = [{transform_indices = @transform_0, window_bounds = array<i64: 128, 64>}, {pipeline_mode = #tpu.pipeline_mode<synchronous>, transform_indices = @transform_1, window_bounds = array<i64: 128, 64>}, {pipeline_mode = #tpu.pipeline_mode<synchronous>, transform_indices = @transform_2, window_bounds = array<i64: 16, 64>}, {transform_indices = @transform_3, window_bounds = array<i64: 16, 128>}]} {
    %c0 = arith.constant 0 : index
    %c0_0 = arith.constant 0 : index
    %0 = vector.load %arg1[%c0, %c0_0] : memref<128x64xf32, #tpu.memory_space<vmem>>, vector<128x64xf32>
    %c0_1 = arith.constant 0 : index
    %c0_2 = arith.constant 0 : index
    %1 = vector.load %arg2[%c0_1, %c0_2] : memref<128x64xf32, #tpu.memory_space<vmem>>, vector<128x64xf32>
    %cst = arith.constant dense<0.000000e+00> : vector<128x128xf32>
    %2 = tpu.matmul %1, %0, %cst {dimension_numbers = #tpu.dot_dimension_numbers<[1], [1], [0], [0], [0, 0, 1, 0], [], []>} : vector<128x64xf32>, vector<128x64xf32>, vector<128x128xf32> -> vector<128x128xf32>
    %3 = vector.extract_strided_slice %2 {offsets = [0, 0], sizes = [64, 128], strides = [1, 1]} : vector<128x128xf32> to vector<64x128xf32>
    %4 = vector.extract_strided_slice %2 {offsets = [64, 0], sizes = [64, 128], strides = [1, 1]} : vector<128x128xf32> to vector<64x128xf32>
    %5 = arith.mulf %3, %3 : vector<64x128xf32>
    %6 = arith.mulf %4, %4 : vector<64x128xf32>
    %7 = arith.addf %5, %6 : vector<64x128xf32>
    %8 = math.sqrt %7 : vector<64x128xf32>
    %c0_3 = arith.constant 0 : index
    %c0_4 = arith.constant 0 : index
    %9 = vector.load %arg3[%c0_3, %c0_4] : memref<16x64xf32, #tpu.memory_space<vmem>>, vector<16x64xf32>
    %cst_5 = arith.constant dense<0.000000e+00> : vector<16x128xf32>
    %10 = tpu.matmul %9, %8, %cst_5 {dimension_numbers = #tpu.dot_dimension_numbers<[1], [0], [0], [1], [0, 0, 1, 1], [], []>} : vector<16x64xf32>, vector<64x128xf32>, vector<16x128xf32> -> vector<16x128xf32>
    %cst_6 = arith.constant 9.99999974E-6 : f32
    %11 = vector.broadcast %cst_6 : f32 to vector<16x128xf32>
    %12 = arith.maximumf %10, %11 : vector<16x128xf32>
    %13 = math.log %12 : vector<16x128xf32>
    %c0_7 = arith.constant 0 : index
    %c0_8 = arith.constant 0 : index
    %14 = vector.load %arg4[%c0_7, %c0_8] : memref<16x128xf32, #tpu.memory_space<vmem>>, vector<16x128xf32>
    tpu.vector_store %arg4[%c0_7, %c0_8], %13 {strides = array<i32>} : memref<16x128xf32, #tpu.memory_space<vmem>>, vector<16x128xf32>,
    return
  }
  func.func @transform_0(%arg0: i32) -> (i32, i32) {
    %c0_i32 = arith.constant 0 : i32
    %c0_i32_0 = arith.constant 0 : i32
    return %arg0, %c0_i32 : i32, i32
  }
  func.func @transform_1(%arg0: i32) -> (i32, i32) {
    %c0_i32 = arith.constant 0 : i32
    %c0_i32_0 = arith.constant 0 : i32
    %c0_i32_1 = arith.constant 0 : i32
    return %c0_i32, %c0_i32_0 : i32, i32
  }
  func.func @transform_2(%arg0: i32) -> (i32, i32) {
    %c0_i32 = arith.constant 0 : i32
    %c0_i32_0 = arith.constant 0 : i32
    %c0_i32_1 = arith.constant 0 : i32
    return %c0_i32, %c0_i32_0 : i32, i32
  }
  func.func @transform_3(%arg0: i32) -> (i32, i32) {
    %c0_i32 = arith.constant 0 : i32
    %c0_i32_0 = arith.constant 0 : i32
    return %c0_i32, %arg0 : i32, i32
  }
}

</mosaic_0001>

<bundles_post_ra>
// kernel: audio2mel.1
= control target key start
LH: loop header
LB: loop body
LE: loop exit
PB: predicated region body
PF: predicated region fallthrough
CT: control target
= control target key end

     0   :  { %vm46_vm0 = vcmask 523264   ;;  %s751_s0 = inlined_call_operand.vmem [shape: f32[128,64], index: 0, kind: input, shape index: {}]   ;;  %s752_s1 = inlined_call_operand.vmem [shape: f32[128,64], index: 1, kind: input, shape index: {}]   ;;  %s753_s2 = inlined_call_operand.vmem [shape: f32[16,64], index: 2, kind: input, shape index: {}]   ;;  %s754_s3 = inlined_call_operand.vmem [shape: f32[16,128], index: 3, kind: output, shape index: {}]  }
   0x1   :  { %v29_v0 = vld [vmem:[%s751_s0 + $0x78] sm:$0xff]  ;;  %v28_v1 = vld [vmem:[%s751_s0 + $0x70] sm:$0xff]  ;;  %v27_v2 = vld [vmem:[%s751_s0 + $0x68] sm:$0xff] }
   0x2   :  { %371 = vmatpush.xpose.msk.msra.mxu0 %vm46_vm0, %v29_v0  ;;  %406 = vmatpush.xpose.msk.msra.mxu2 %vm46_vm0, %v29_v0  ;;  %v26_v3 = vld [vmem:[%s751_s0 + $0x60] sm:$0xff]  ;;  %v25_v4 = vld [vmem:[%s751_s0 + $0x58] sm:$0xff]  ;;  %v24_v5 = vld [vmem:[%s751_s0 + $0x50] sm:$0xff] }
   0x3   :  { %407 = vmatpush.xpose.msk.msra.mxu3 %vm46_vm0, %v29_v0  ;;  %405 = vmatpush.xpose.msk.msra.mxu1 %vm46_vm0, %v29_v0  ;;  %v23_v6 = vld [vmem:[%s751_s0 + $0x48] sm:$0xff]  ;;  %v22_v7 = vld [vmem:[%s751_s0 + $0x40] sm:$0xff]  ;;  %v21_v8 = vld [vmem:[%s751_s0 + $0x38] sm:$0xff] }
   0x4   :  { %v20_v9 = vld [vmem:[%s751_s0 + $0x30] sm:$0xff]  ;;  %v19_v10 = vld [vmem:[%s751_s0 + $0x28] sm:$0xff]  ;;  %v18_v11 = vld [vmem:[%s751_s0 + $0x20] sm:$0xff] }
   0x5   :  { %v17_v12 = vld [vmem:[%s751_s0 + $0x18] sm:$0xff]  ;;  %v16_v13 = vld [vmem:[%s751_s0 + $0x10] sm:$0xff]  ;;  %v15_v14 = vld [vmem:[%s751_s0 + $0x8] sm:$0xff] }
   0x6   :  { %372 = vmatpush.xpose.msk.msra.mxu0 %vm46_vm0, %v28_v1  ;;  %409 = vmatpush.xpose.msk.msra.mxu2 %vm46_vm0, %v28_v1  ;;  %v14_v15 = vld [vmem:[%s751_s0] sm:$0xff]  ;;  %v41_v18 = vld [vmem:[%s752_s1 + $0x58] sm:$0xff]  ;;  %v35_v19 = vld [vmem:[%s752_s1 + $0x28] sm:$0xff] }
   0x7   :  { %410 = vmatpush.xpose.msk.msra.mxu3 %vm46_vm0, %v28_v1  ;;  %408 = vmatpush.xpose.msk.msra.mxu1 %vm46_vm0, %v28_v1  ;;  %v30_v16 = vld [vmem:[%s752_s1] sm:$0xff]  ;;  %v31_v20 = vld [vmem:[%s752_s1 + $0x8] sm:$0xff]  ;;  %v36_v23 = vld [vmem:[%s752_s1 + $0x30] sm:$0xff] }
   0x8   :  { %v38_v17 = vld [vmem:[%s752_s1 + $0x40] sm:$0xff]  ;;  %v39_v21 = vld [vmem:[%s752_s1 + $0x48] sm:$0xff]  ;;  %v32_v24 = vld [vmem:[%s752_s1 + $0x10] sm:$0xff] }
   0x9   :  { %v42_v22 = vld [vmem:[%s752_s1 + $0x60] sm:$0xff]  ;;  %v40_v25 = vld [vmem:[%s752_s1 + $0x50] sm:$0xff]  ;;  %v43_v26 = vld [vmem:[%s752_s1 + $0x68] sm:$0xff] }
   0xa   :  { %373 = vmatpush.xpose.msk.msra.mxu0 %vm46_vm0, %v27_v2  ;;  %412 = vmatpush.xpose.msk.msra.mxu2 %vm46_vm0, %v27_v2  ;;  %v37_v27 = vld [vmem:[%s752_s1 + $0x38] sm:$0xff]  ;;  %v44_v29 = vld [vmem:[%s752_s1 + $0x70] sm:$0xff]  ;;  %v34_v30 = vld [vmem:[%s752_s1 + $0x20] sm:$0xff] }
   0xb   :  { %413 = vmatpush.xpose.msk.msra.mxu3 %vm46_vm0, %v27_v2  ;;  %411 = vmatpush.xpose.msk.msra.mxu1 %vm46_vm0, %v27_v2  ;;  %v33_v28 = vld [vmem:[%s752_s1 + $0x18] sm:$0xff] }
   0xc   :  { %v45_v31 = vld [vmem:[%s752_s1 + $0x78] sm:$0xff] }
   0xe   :  { %374 = vmatpush.xpose.msk.msra.mxu0 %vm46_vm0, %v26_v3  ;;  %415 = vmatpush.xpose.msk.msra.mxu2 %vm46_vm0, %v26_v3 }
   0xf   :  { %416 = vmatpush.xpose.msk.msra.mxu3 %vm46_vm0, %v26_v3  ;;  %414 = vmatpush.xpose.msk.msra.mxu1 %vm46_vm0, %v26_v3 }
  0x12   :  { %375 = vmatpush.xpose.msk.msra.mxu0 %vm46_vm0, %v25_v4  ;;  %418 = vmatpush.xpose.msk.msra.mxu2 %vm46_vm0, %v25_v4 }
  0x13   :  { %419 = vmatpush.xpose.msk.msra.mxu3 %vm46_vm0, %v25_v4  ;;  %417 = vmatpush.xpose.msk.msra.mxu1 %vm46_vm0, %v25_v4 }
  0x16   :  { %376 = vmatpush.xpose.msk.msra.mxu0 %vm46_vm0, %v24_v5  ;;  %421 = vmatpush.xpose.msk.msra.mxu2 %vm46_vm0, %v24_v5 }
  0x17   :  { %422 = vmatpush.xpose.msk.msra.mxu3 %vm46_vm0, %v24_v5  ;;  %420 = vmatpush.xpose.msk.msra.mxu1 %vm46_vm0, %v24_v5 }
  0x1a   :  { %377 = vmatpush.xpose.msk.msra.mxu0 %vm46_vm0, %v23_v6  ;;  %424 = vmatpush.xpose.msk.msra.mxu2 %vm46_vm0, %v23_v6 }
  0x1b   :  { %425 = vmatpush.xpose.msk.msra.mxu3 %vm46_vm0, %v23_v6  ;;  %423 = vmatpush.xpose.msk.msra.mxu1 %vm46_vm0, %v23_v6 }
  0x1e   :  { %378 = vmatpush.xpose.msk.msra.mxu0 %vm46_vm0, %v22_v7  ;;  %427 = vmatpush.xpose.msk.msra.mxu2 %vm46_vm0, %v22_v7 }
  0x1f   :  { %428 = vmatpush.xpose.msk.msra.mxu3 %vm46_vm0, %v22_v7  ;;  %426 = vmatpush.xpose.msk.msra.mxu1 %vm46_vm0, %v22_v7 }
  0x22   :  { %379 = vmatpush.xpose.msk.msra.mxu0 %vm46_vm0, %v21_v8  ;;  %430 = vmatpush.xpose.msk.msra.mxu2 %vm46_vm0, %v21_v8 }
  0x23   :  { %431 = vmatpush.xpose.msk.msra.mxu3 %vm46_vm0, %v21_v8  ;;  %429 = vmatpush.xpose.msk.msra.mxu1 %vm46_vm0, %v21_v8 }
  0x26   :  { %380 = vmatpush.xpose.msk.msra.mxu0 %vm46_vm0, %v20_v9  ;;  %433 = vmatpush.xpose.msk.msra.mxu2 %vm46_vm0, %v20_v9 }
  0x27   :  { %434 = vmatpush.xpose.msk.msra.mxu3 %vm46_vm0, %v20_v9  ;;  %432 = vmatpush.xpose.msk.msra.mxu1 %vm46_vm0, %v20_v9 }
  0x2a   :  { %381 = vmatpush.xpose.msk.msra.mxu0 %vm46_vm0, %v19_v10  ;;  %436 = vmatpush.xpose.msk.msra.mxu2 %vm46_vm0, %v19_v10 }
  0x2b   :  { %437 = vmatpush.xpose.msk.msra.mxu3 %vm46_vm0, %v19_v10  ;;  %435 = vmatpush.xpose.msk.msra.mxu1 %vm46_vm0, %v19_v10 }
  0x2e   :  { %382 = vmatpush.xpose.msk.msra.mxu0 %vm46_vm0, %v18_v11  ;;  %439 = vmatpush.xpose.msk.msra.mxu2 %vm46_vm0, %v18_v11 }
  0x2f   :  { %440 = vmatpush.xpose.msk.msra.mxu3 %vm46_vm0, %v18_v11  ;;  %438 = vmatpush.xpose.msk.msra.mxu1 %vm46_vm0, %v18_v11 }
  0x32   :  { %383 = vmatpush.xpose.msk.msra.mxu0 %vm46_vm0, %v17_v12  ;;  %442 = vmatpush.xpose.msk.msra.mxu2 %vm46_vm0, %v17_v12 }
  0x33   :  { %443 = vmatpush.xpose.msk.msra.mxu3 %vm46_vm0, %v17_v12  ;;  %441 = vmatpush.xpose.msk.msra.mxu1 %vm46_vm0, %v17_v12 }
  0x36   :  { %384 = vmatpush.xpose.msk.msra.mxu0 %vm46_vm0, %v16_v13  ;;  %445 = vmatpush.xpose.msk.msra.mxu2 %vm46_vm0, %v16_v13 }
  0x37   :  { %446 = vmatpush.xpose.msk.msra.mxu3 %vm46_vm0, %v16_v13  ;;  %444 = vmatpush.xpose.msk.msra.mxu1 %vm46_vm0, %v16_v13 }
  0x3a   :  { %385 = vmatpush.xpose.msk.msra.mxu0 %vm46_vm0, %v15_v14  ;;  %448 = vmatpush.xpose.msk.msra.mxu2 %vm46_vm0, %v15_v14 }
  0x3b   :  { %449 = vmatpush.xpose.msk.msra.mxu3 %vm46_vm0, %v15_v14  ;;  %447 = vmatpush.xpose.msk.msra.mxu1 %vm46_vm0, %v15_v14 }
  0x3e   :  { %386 = vmatpush.xpose.msk.msra.mxu0 %vm46_vm0, %v14_v15  ;;  %451 = vmatpush.xpose.msk.msra.mxu2 %vm46_vm0, %v14_v15 }
  0x3f   :  { %452 = vmatpush.xpose.msk.msra.mxu3 %vm46_vm0, %v14_v15  ;;  %450 = vmatpush.xpose.msk.msra.mxu1 %vm46_vm0, %v14_v15 }
  0x41   :  { %387 = vmatmul.msk.f32.vlgmr.msra.gmra.mxu0 %vm46_vm0, %v30_v16  ;;  %395 = vmatmul.msk.f32.vlgmr.msra.gmra.mxu2 %vm46_vm0, %v38_v17 }
  0x42   :  { %398 = vmatmul.msk.f32.vlgmr.msra.gmra.mxu3 %vm46_vm0, %v41_v18  ;;  %392 = vmatmul.msk.f32.vlgmr.msra.gmra.mxu1 %vm46_vm0, %v35_v19 }
  0x49   :  { %388 = vmatmul.msk.f32.gmra.mxu0 %vm46_vm0, %v31_v20  ;;  %396 = vmatmul.msk.f32.gmra.mxu2 %vm46_vm0, %v39_v21 }
  0x4a   :  { %399 = vmatmul.msk.f32.gmra.mxu3 %vm46_vm0, %v42_v22  ;;  %393 = vmatmul.msk.f32.gmra.mxu1 %vm46_vm0, %v36_v23 }
  0x51   :  { %389 = vmatmul.msk.f32.gmra.mxu0 %vm46_vm0, %v32_v24  ;;  %397 = vmatmul.msk.f32.gmra.mxu2 %vm46_vm0, %v40_v25 }
  0x52   :  { %400 = vmatmul.msk.f32.gmra.mxu3 %vm46_vm0, %v43_v26  ;;  %394 = vmatmul.msk.f32.gmra.mxu1 %vm46_vm0, %v37_v27 }
  0x59   :  { %390 = vmatmul.msk.f32.gmra.mxu0 %vm46_vm0, %v33_v28 }
  0x5a   :  { %401 = vmatmul.msk.f32.gmra.mxu3 %vm46_vm0, %v44_v29 }
  0x61   :  { %391 = vmatmul.msk.f32.gmra.mxu0 %vm46_vm0, %v34_v30 }
  0x62   :  { %402 = vmatmul.msk.f32.gmra.mxu3 %vm46_vm0, %v45_v31 }
  0xbe   :  { %v160_v32 = vpop.f32.mrf.mxu0 }
  0xbf   :  { %v175_v37 = vpop.f32.mrf.mxu1  ;;  %v208_v52 = vmul.f32 %v160_v32, %v160_v32 }
  0xc0   :  { %v213_v41 = vmul.f32 %v175_v37, %v175_v37 }
  0xc4   :  { %v184_v33 = vpop.f32.mrf.mxu2 }
  0xc5   :  { %v193_v34 = vpop.f32.mrf.mxu3  ;;  %v216_v53 = vmul.f32 %v184_v33, %v184_v33 }
  0xc6   :  { %v163_v35 = vpop.f32.mrf.mxu0  ;;  %v219_v48 = vmul.f32 %v193_v34, %v193_v34 }
  0xc7   :  { %v178_v44 = vpop.f32.mrf.mxu1  ;;  %v209_v56 = vmul.f32 %v163_v35, %v163_v35  ;;  %v678_v0 = vadd.f32 %v216_v53, %v208_v52 }
  0xc8   :  { %v214_v51 = vmul.f32 %v178_v44, %v178_v44 }
  0xc9   :  { %vm239_vm14 = vcmp.eq.f32.partialorder %v678_v0, inf }
  0xcc   :  { %v187_v39 = vpop.f32.mrf.mxu2 }
  0xcd   :  { %v196_v36 = vpop.f32.mrf.mxu3  ;;  %v217_v57 = vmul.f32 %v187_v39, %v187_v39 }
  0xce   :  { %v166_v38 = vpop.f32.mrf.mxu0  ;;  %v220_v60 = vmul.f32 %v196_v36, %v196_v36 }
  0xcf   :  { %v210_v49 = vmul.f32 %v166_v38, %v166_v38  ;;  %v181_v2 = vpop.f32.mrf.mxu1  ;;  %v683_v3 = vadd.f32 %v217_v57, %v209_v56 }
  0xd0   :  { %v215_v5 = vmul.f32 %v181_v2, %v181_v2 }
  0xd1   :  { %vm251_vm12 = vcmp.eq.f32.partialorder %v683_v3, inf  ;;  %vm253_vm15 = vcmp.eq.f32.partialorder %v683_v3, 0.0 }
  0xd4   :  { %v190_v45 = vpop.f32.mrf.mxu2 }
  0xd5   :  { %v199_v40 = vpop.f32.mrf.mxu3  ;;  %v218_v50 = vmul.f32 %v190_v45, %v190_v45 }
  0xd6   :  { %v221_v42 = vmul.f32 %v199_v40, %v199_v40  ;;  %v169_v43 = vpop.f32.mrf.mxu0 }
  0xd7   :  { %v211_v46 = vmul.f32 %v169_v43, %v169_v43  ;;  %v674_v62 = vadd.f32 %v218_v50, %v210_v49 }
  0xd8   :  { %v669_v47 = vadd.f32 %v221_v42, %v213_v41 }
  0xd9   :  { %v671_v54 = vadd.f32 %v219_v48, %v211_v46  ;;  %vm263_vm10 = vcmp.eq.f32.partialorder %v674_v62, inf  ;;  %vm265_vm13 = vcmp.eq.f32.partialorder %v674_v62, 0.0 }
  0xda   :  { %453 = vrsqrt.f32 %v669_v47  ;;  %vm299_vm4 = vcmp.eq.f32.partialorder %v669_v47, inf  ;;  %vm301_vm7 = vcmp.eq.f32.partialorder %v669_v47, 0.0 }
  0xdb   :  { %455 = vrsqrt.f32 %v671_v54  ;;  %vm275_vm8 = vcmp.eq.f32.partialorder %v671_v54, inf  ;;  %vm277_vm11 = vcmp.eq.f32.partialorder %v671_v54, 0.0 }
  0xdd   :  { %v202_v55 = vpop.f32.mrf.mxu3 }
  0xde   :  { %v222_v58 = vmul.f32 %v202_v55, %v202_v55  ;;  %v172_v59 = vpop.f32.mrf.mxu0 }
  0xdf   :  { %v212_v61 = vmul.f32 %v172_v59, %v172_v59 }
  0xe0   :  { %v676_v63 = vadd.f32 %v222_v58, %v214_v51  ;;  %v454_v4 = vpop.eup %453 }
  0xe1   :  { %v680_v1 = vadd.f32 %v220_v60, %v212_v61  ;;  %v456_v8 = vpop.eup %455  ;;  %v293_v9 = vmul.f32 %v454_v4, %v669_v47 }
  0xe2   :  { %457 = vrsqrt.f32 %v676_v63  ;;  %v269_v19 = vmul.f32 %v456_v8, %v671_v54  ;;  %vm311_vm3 = vcmp.eq.f32.partialorder %v676_v63, inf  ;;  %vm313_vm5 = vcmp.eq.f32.partialorder %v676_v63, 0.0 }
  0xe3   :  { %459 = vrsqrt.f32 %v680_v1  ;;  %v294_v17 = vmul.f32 %v454_v4, %v293_v9  ;;  %vm287_vm6 = vcmp.eq.f32.partialorder %v680_v1, inf  ;;  %vm289_vm9 = vcmp.eq.f32.partialorder %v680_v1, 0.0 }
  0xe4   :  { %461 = vrsqrt.f32 %v674_v62  ;;  %v270_v26 = vmul.f32 %v456_v8, %v269_v19 }
  0xe5   :  { %v205_v6 = vpop.f32.mrf.mxu3  ;;  %463 = vrsqrt.f32 %v678_v0  ;;  %v295_v25 = vmul.f32 0.5, %v294_v17 }
  0xe6   :  { %v223_v7 = vmul.f32 %v205_v6, %v205_v6  ;;  %465 = vrsqrt.f32 %v683_v3  ;;  %v271_v36 = vmul.f32 0.5, %v270_v26 }
  0xe7   :  { %v296_v35 = vsub.f32 1.5, %v295_v25  ;;  %v242_v25 = vand.u32 2147483648, %v678_v0 }
  0xe8   :  { %v458_v10 = vpop.eup %457  ;;  %v231_v11 = vadd.f32 %v223_v7, %v215_v5  ;;  %v272_v45 = vsub.f32 1.5, %v271_v36  ;;  %v314_v5 = vand.u32 2147483648, %v676_v63 }
  0xe9   :  { %v460_v12 = vpop.eup %459  ;;  %v305_v13 = vmul.f32 %v458_v10, %v676_v63  ;;  %v297_v44 = vmul.f32 %v454_v4, %v296_v35 }
  0xea   :  { %v462_v14 = vpop.eup %461  ;;  %467 = vrsqrt.f32 %v231_v11  ;;  %v281_v18 = vmul.f32 %v460_v12, %v680_v1  ;;  %v273_v56 = vmul.f32 %v456_v8, %v272_v45  ;;  %vm323_vm1 = vcmp.eq.f32.partialorder %v231_v11, inf }
  0xeb   :  { %v692_v15 = vpop.eup %463  ;;  %v306_v16 = vmul.f32 %v458_v10, %v305_v13  ;;  %v257_v23 = vmul.f32 %v462_v14, %v674_v62  ;;  %v298_v55 = vmul.f32 %v297_v44, %v669_v47  ;;  %vm325_vm2 = vcmp.eq.f32.partialorder %v231_v11, 0.0 }
  0xec   :  { %v466_v20 = vpop.eup %465  ;;  %v282_v22 = vmul.f32 %v460_v12, %v281_v18  ;;  %v233_v24 = vmul.f32 %v692_v15, %v678_v0  ;;  %v326_v58 = vand.u32 2147483648, %v231_v11  ;;  %v274_v7 = vmul.f32 %v273_v56, %v671_v54 }
  0xed   :  { %v307_v21 = vmul.f32 0.5, %v306_v16  ;;  %v245_v27 = vmul.f32 %v466_v20, %v683_v3  ;;  %v258_v32 = vmul.f32 %v462_v14, %v257_v23  ;;  %v300_v6 = vsel %vm299_vm4, %v669_v47, %v298_v55 }
  0xee   :  { %v283_v31 = vmul.f32 0.5, %v282_v22  ;;  %v234_v33 = vmul.f32 %v692_v15, %v233_v24  ;;  %v276_v16 = vsel %vm275_vm8, %v671_v54, %v274_v7  ;;  %v254_v23 = vand.u32 2147483648, %v683_v3 }
  0xef   :  { %v308_v30 = vsub.f32 1.5, %v307_v21  ;;  %v246_v37 = vmul.f32 %v466_v20, %v245_v27  ;;  %v259_v41 = vmul.f32 0.5, %v258_v32  ;;  %v266_v21 = vand.u32 2147483648, %v674_v62 }
  0xf0   :  { %v468_v28 = vpop.eup %467  ;;  %v284_v40 = vsub.f32 1.5, %v283_v31  ;;  %v235_v42 = vmul.f32 0.5, %v234_v33 }
  0xf1   :  { %v317_v29 = vmul.f32 %v468_v28, %v231_v11  ;;  %v309_v39 = vmul.f32 %v458_v10, %v308_v30  ;;  %v247_v46 = vmul.f32 0.5, %v246_v37  ;;  %v260_v51 = vsub.f32 1.5, %v259_v41 }
  0xf2   :  { %v285_v50 = vmul.f32 %v460_v12, %v284_v40  ;;  %v236_v52 = vsub.f32 1.5, %v235_v42  ;;  %v302_v10 = vand.u32 2147483648, %v669_v47  ;;  %v278_v47 = vand.u32 2147483648, %v671_v54 }
  0xf3   :  { %v318_v34 = vmul.f32 %v468_v28, %v317_v29  ;;  %v310_v49 = vmul.f32 %v309_v39, %v676_v63  ;;  %v248_v57 = vsub.f32 1.5, %v247_v46  ;;  %v261_v2 = vmul.f32 %v462_v14, %v260_v51 }
  0xf4   :  { %v286_v61 = vmul.f32 %v285_v50, %v680_v1  ;;  %v237_v13 = vmul.f32 %v692_v15, %v236_v52  ;;  %v290_v14 = vand.u32 2147483648, %v680_v1 }
  0xf5   :  { %v319_v38 = vmul.f32 0.5, %v318_v34  ;;  %v312_v60 = vsel %vm311_vm3, %v676_v63, %v310_v49  ;;  %v249_v8 = vmul.f32 %v466_v20, %v248_v57  ;;  %v262_v12 = vmul.f32 %v261_v2, %v674_v62 }
  0xf6   :  { %v315_v9 = vsel %vm313_vm5, %v314_v5, %v312_v60  ;;  %v303_v63 = vsel %vm301_vm7, %v302_v10, %v300_v6  ;;  %v238_v19 = vmul.f32 %v237_v13, %v678_v0  ;;  %v279_v20 = vsel %vm277_vm11, %v278_v47, %v276_v16 }
  0xf7   :  { %v320_v43 = vsub.f32 1.5, %v319_v38  ;;  %v250_v17 = vmul.f32 %v249_v8, %v683_v3  ;;  %v264_v15 = vsel %vm263_vm10, %v674_v62, %v262_v12  ;;  %v328_v62 = vld [vmem:[%s753_s2] sm:$0xff] }
  0xf8   :  { %v267_v22 = vsel %vm265_vm13, %v266_v21, %v264_v15  ;;  %v240_v54 = vsel %vm239_vm14, %v678_v0, %v238_v19 }
  0xf9   :  { %v321_v48 = vmul.f32 %v468_v28, %v320_v43 }
  0xfb   :  { %v322_v53 = vmul.f32 %v321_v48, %v231_v11 }
  0xfd   :  { %v324_v59 = vsel %vm323_vm1, %v231_v11, %v322_v53  ;;  %v288_v11 = vsel %vm287_vm6, %v680_v1, %v286_v61  ;;  %v252_v1 = vsel %vm251_vm12, %v683_v3, %v250_v17  ;;  %vm241_vm1 = vcmp.eq.f32.partialorder %v678_v0, 0.0  ;;  %v329_v3 = vld [vmem:[%s753_s2 + $0x8] sm:$0xff] }
  0xfe   :  { %v327_v4 = vsel %vm325_vm2, %v326_v58, %v324_v59  ;;  %v291_v18 = vsel %vm289_vm9, %v290_v14, %v288_v11  ;;  %v255_v24 = vsel %vm253_vm15, %v254_v23, %v252_v1  ;;  %v243_v26 = vsel %vm241_vm1, %v242_v25, %v240_v54 }
  0xff   :  { %344 = vmatpush.msrb.mxu1 %v327_v4 }
 0x101   :  { %345 = vmatpush.msrb.mxu1 %v315_v9 }
 0x103   :  { %346 = vmatpush.msrb.mxu1 %v303_v63 }
 0x105   :  { %347 = vmatpush.msrb.mxu1 %v291_v18 }
 0x107   :  { %348 = vmatpush.msrb.mxu1 %v279_v20 }
 0x109   :  { %349 = vmatpush.msrb.mxu1 %v267_v22 }
 0x10b   :  { %350 = vmatpush.msrb.mxu1 %v255_v24 }
 0x10d   :  { %351 = vmatpush.msrb.mxu1 %v243_v26 }
 0x10e   :  { %403 = vmatmul.msk.f32.vlgmr.msrb.gmra.mxu1 %vm46_vm0, %v328_v62 }
 0x116   :  { %404 = vmatmul.msk.f32.gmra.mxu1 %vm46_vm0, %v329_v3 }
 0x18b   :  { %v353_v27 = vpop.f32.mrf.mxu1 }
 0x18c   :  { %v359_v28 = vmax.f32 %v353_v27, 1e-05 }
 0x18e   :  { %469 = vlog2.f32 %v359_v28 }
 0x193   :  { %v356_v29 = vpop.f32.mrf.mxu1 }
 0x194   :  { %v470_v30 = vpop.eup %469  ;;  %v360_v0 = vmax.f32 %v356_v29, 1e-05 }
 0x195   :  { %v362_v31 = vmul.f32 0.6931472, %v470_v30 }
 0x196   :  { %471 = vlog2.f32 %v360_v0 }
 0x197   :  { %365 = vst [vmem:[%s754_s3] sm:$0xff] %v362_v31 }
 0x19c   :  { %v472_v32 = vpop.eup %471 }
 0x19d   :  { %v364_v33 = vmul.f32 0.6931472, %v472_v32 }
 0x19f   :  { %366 = vst [vmem:[%s754_s3 + $0x8] sm:$0xff] %v364_v33 }

</bundles_post_ra>
